<compile_context>
chip_gen: v6e
topology: v6e:2x2x1
jax: 0.10.0
libtpu: 0.0.40
codegen_flags: <defaults>
</compile_context>

<pallas_src>
import functools

import jax
import jax.numpy as jnp
from jax.experimental import pallas as pl
from jax.experimental.pallas import tpu as pltpu

LANE = 128
SUBLANE = 16          # bf16 packs 16 rows per vreg sublane group


def _round_up(x, m):
    return ((x + m - 1) // m) * m


def _choose_tile_b(batch):
    """Pick the batch tile.

    Goals: >= 2 grid steps whenever batch >= 2*SUBLANE (so both v7x
    TensorCores get work), minimal row padding for awkward batch sizes, and
    long MXU runs (tile 512) only once the batch is large enough to still
    leave >= 4 grid steps.
    """
    if batch < 2 * SUBLANE:                       # tiny latency path: one step
        return _round_up(max(batch, 1), SUBLANE)
    if batch >= 4 * 512:                          # large batch: long MXU runs
        return 512
    if batch >= 2 * 256:
        return 256
    if batch >= 2 * 128:
        return 128
    # 32 <= batch < 256: split into two tiles so both TCs are busy.
    return _round_up(pl.cdiv(batch, 2), SUBLANE)


def dqn_kernel(x_ref,
               w1, b1, w2, b2, w3, b3, w4, b4, w5, b5, w6, b6, w7, b7,
               o_ref):
    """Fused 7-layer MLP on one batch tile.

    x arrives bf16, weights are bf16, every matmul accumulates in f32
    (preferred_element_type); bias-add and ReLU run in f32; activations are
    narrowed to bf16 only as matmul inputs; the output is stored bf16.
    """
    h = x_ref[...]

    def layer(h_bf16, w_ref, b_ref, relu=True):
        acc = jnp.dot(h_bf16, w_ref[...], preferred_element_type=jnp.float32)
        acc = acc + b_ref[...]
        if relu:
            acc = jnp.maximum(acc, 0.0)
        return acc

    h = layer(h, w1, b1).astype(jnp.bfloat16)
    h = layer(h, w2, b2).astype(jnp.bfloat16)
    h = layer(h, w3, b3).astype(jnp.bfloat16)
    h = layer(h, w4, b4).astype(jnp.bfloat16)
    h = layer(h, w5, b5).astype(jnp.bfloat16)
    h = layer(h, w6, b6).astype(jnp.bfloat16)
    o_ref[...] = layer(h, w7, b7, relu=False).astype(o_ref.dtype)


@functools.partial(jax.jit, static_argnames=("action_size",))
def dqn_forward(x, params, *, action_size):
    """x: (B, state_size) f32.  params: flat tuple (w1,b1,...,w7,b7) with
    weights (in, out) in bf16, biases (1, out) in f32; layer 7 pre-padded to a
    lane-dense output width (multiple of 128).  Returns (B, action_size) f32."""
    batch, state_size = x.shape
    out_pad = params[-1].shape[-1]          # padded action dim (multiple of 128)

    tile_b = _choose_tile_b(batch)
    padded_b = _round_up(batch, tile_b)

    xb = x.astype(jnp.bfloat16)             # halve x DMA; drop in-kernel cast
    if padded_b != batch:
        xb = jnp.pad(xb, ((0, padded_b - batch), (0, 0)))

    grid = (padded_b // tile_b,)

    # Activations/output tiled on batch; weights/biases use a constant block
    # index so they are DMA'd once and stay resident in VMEM across the grid.
    in_specs = [pl.BlockSpec((tile_b, state_size), lambda i: (i, 0))]
    in_specs += [pl.BlockSpec(p.shape, lambda i: (0, 0)) for p in params]

    # Advisory cost hint so XLA schedules surrounding ops around the kernel.
    flops = 2 * padded_b * sum(int(w.shape[0]) * int(w.shape[1])
                               for w in params[0::2])
    bytes_accessed = (
        xb.size * xb.dtype.itemsize
        + sum(p.size * p.dtype.itemsize for p in params)
        + padded_b * out_pad * 2)           # bf16 output

    out = pl.pallas_call(
        dqn_kernel,
        out_shape=jax.ShapeDtypeStruct((padded_b, out_pad), jnp.bfloat16),
        grid=grid,
        in_specs=in_specs,
        out_specs=pl.BlockSpec((tile_b, out_pad), lambda i: (i, 0)),
        compiler_params=pltpu.CompilerParams(
            dimension_semantics=("parallel",)),
        cost_estimate=pl.CostEstimate(
            flops=flops, transcendentals=0, bytes_accessed=bytes_accessed),
    )(xb, *params)

    return out[:batch, :action_size].astype(jnp.float32)


def init_dqn_params(key, state_size, action_size):
    """Deterministic init mirroring nn.Linear defaults: U(+-1/sqrt(fan_in)).

    Weights returned as (in, out) in bf16; biases as (1, out) in f32.
    The final layer is zero-padded on the output axis to a multiple of 128
    so the kernel's store path is lane-dense.
    """
    dims = [state_size, 512, 256, 256, 256, 256, 256, action_size]
    out_pad = _round_up(action_size, LANE)
    params = []
    for i in range(7):
        fan_in, fan_out = dims[i], dims[i + 1]
        key, kw, kb = jax.random.split(key, 3)
        bound = 1.0 / (fan_in ** 0.5)
        w = jax.random.uniform(kw, (fan_in, fan_out), jnp.float32, -bound, bound)
        b = jax.random.uniform(kb, (1, fan_out), jnp.float32, -bound, bound)
        if i == 6 and fan_out != out_pad:
            w = jnp.pad(w, ((0, 0), (0, out_pad - fan_out)))
            b = jnp.pad(b, ((0, 0), (0, out_pad - fan_out)))
        params.extend([w.astype(jnp.bfloat16), b])
    return tuple(params)


def dqn_reference(x, params, action_size):
    """Plain-JAX reference mirroring the kernel's bf16-operand / f32-accum math
    (including the final bf16 output store)."""
    h = x.astype(jnp.float32)
    for i in range(7):
        w, b = params[2 * i], params[2 * i + 1]
        acc = jnp.dot(h.astype(jnp.bfloat16), w,
                      preferred_element_type=jnp.float32) + b
        h = jnp.maximum(acc, 0.0) if i < 6 else acc
    h = h.astype(jnp.bfloat16).astype(jnp.float32)
    return h[:, :action_size]


if __name__ == "__main__":
    key = jax.random.PRNGKey(0)
    key, kx = jax.random.split(key)

    batch = 8
    state_size = 16
    action_size = 4

    params = init_dqn_params(key, state_size, action_size)
    x = jax.random.normal(kx, (batch, state_size), jnp.float32)

    out = jax.block_until_ready(dqn_forward(x, params, action_size=action_size))

    ref = dqn_reference(x, params, action_size)
    assert out.shape == (batch, action_size), out.shape
    assert jnp.allclose(out, ref, atol=2e-2, rtol=2e-2), (
        f"max abs err = {jnp.max(jnp.abs(out - ref))}")

    print("KERNEL_OK")
</pallas_src>

<mosaic_0001>
module attributes {stable_mosaic.version = 11 : i64} {
  func.func @dqn_kernel(%arg0: i32, %arg1: memref<16x16xbf16, #tpu.memory_space<vmem>>, %arg2: memref<16x512xbf16, #tpu.memory_space<vmem>>, %arg3: memref<1x512xf32, #tpu.memory_space<vmem>>, %arg4: memref<512x256xbf16, #tpu.memory_space<vmem>>, %arg5: memref<1x256xf32, #tpu.memory_space<vmem>>, %arg6: memref<256x256xbf16, #tpu.memory_space<vmem>>, %arg7: memref<1x256xf32, #tpu.memory_space<vmem>>, %arg8: memref<256x256xbf16, #tpu.memory_space<vmem>>, %arg9: memref<1x256xf32, #tpu.memory_space<vmem>>, %arg10: memref<256x256xbf16, #tpu.memory_space<vmem>>, %arg11: memref<1x256xf32, #tpu.memory_space<vmem>>, %arg12: memref<256x256xbf16, #tpu.memory_space<vmem>>, %arg13: memref<1x256xf32, #tpu.memory_space<vmem>>, %arg14: memref<256x128xbf16, #tpu.memory_space<vmem>>, %arg15: memref<1x128xf32, #tpu.memory_space<vmem>>, %arg16: memref<16x128xbf16, #tpu.memory_space<vmem>>) attributes {dimension_semantics = [#tpu.dimension_semantics<parallel>], iteration_bounds = array<i64: 1>, scalar_prefetch = 0 : i64, scratch_operands = 0 : i64, tpu.core_type = #tpu.core_type<tc>, window_params = [{transform_indices = @transform_0, window_bounds = array<i64: 16, 16>}, {pipeline_mode = #tpu.pipeline_mode<synchronous>, transform_indices = @transform_1, window_bounds = array<i64: 16, 512>}, {pipeline_mode = #tpu.pipeline_mode<synchronous>, transform_indices = @transform_2, window_bounds = array<i64: 1, 512>}, {pipeline_mode = #tpu.pipeline_mode<synchronous>, transform_indices = @transform_3, window_bounds = array<i64: 512, 256>}, {pipeline_mode = #tpu.pipeline_mode<synchronous>, transform_indices = @transform_4, window_bounds = array<i64: 1, 256>}, {pipeline_mode = #tpu.pipeline_mode<synchronous>, transform_indices = @transform_5, window_bounds = array<i64: 256, 256>}, {pipeline_mode = #tpu.pipeline_mode<synchronous>, transform_indices = @transform_6, window_bounds = array<i64: 1, 256>}, {pipeline_mode = #tpu.pipeline_mode<synchronous>, transform_indices = @transform_7, window_bounds = array<i64: 256, 256>}, {pipeline_mode = #tpu.pipeline_mode<synchronous>, transform_indices = @transform_8, window_bounds = array<i64: 1, 256>}, {pipeline_mode = #tpu.pipeline_mode<synchronous>, transform_indices = @transform_9, window_bounds = array<i64: 256, 256>}, {pipeline_mode = #tpu.pipeline_mode<synchronous>, transform_indices = @transform_10, window_bounds = array<i64: 1, 256>}, {pipeline_mode = #tpu.pipeline_mode<synchronous>, transform_indices = @transform_11, window_bounds = array<i64: 256, 256>}, {pipeline_mode = #tpu.pipeline_mode<synchronous>, transform_indices = @transform_12, window_bounds = array<i64: 1, 256>}, {pipeline_mode = #tpu.pipeline_mode<synchronous>, transform_indices = @transform_13, window_bounds = array<i64: 256, 128>}, {pipeline_mode = #tpu.pipeline_mode<synchronous>, transform_indices = @transform_14, window_bounds = array<i64: 1, 128>}, {transform_indices = @transform_15, window_bounds = array<i64: 16, 128>}]} {
    %c0 = arith.constant 0 : index
    %c0_0 = arith.constant 0 : index
    %0 = vector.load %arg1[%c0, %c0_0] : memref<16x16xbf16, #tpu.memory_space<vmem>>, vector<16x16xbf16>
    %c0_1 = arith.constant 0 : index
    %c0_2 = arith.constant 0 : index
    %1 = vector.load %arg2[%c0_1, %c0_2] : memref<16x512xbf16, #tpu.memory_space<vmem>>, vector<16x512xbf16>
    %cst = arith.constant dense<0.000000e+00> : vector<16x512xf32>
    %2 = tpu.matmul %0, %1, %cst {dimension_numbers = #tpu.dot_dimension_numbers<[1], [0], [0], [1], [0, 0, 1, 1], [], []>} : vector<16x16xbf16>, vector<16x512xbf16>, vector<16x512xf32> -> vector<16x512xf32>
    %c0_3 = arith.constant 0 : index
    %c0_4 = arith.constant 0 : index
    %3 = vector.load %arg3[%c0_3, %c0_4] : memref<1x512xf32, #tpu.memory_space<vmem>>, vector<1x512xf32>
    %4 = vector.broadcast %3 : vector<1x512xf32> to vector<16x512xf32>
    %5 = arith.addf %2, %4 : vector<16x512xf32>
    %cst_5 = arith.constant 0.000000e+00 : f32
    %6 = vector.broadcast %cst_5 : f32 to vector<16x512xf32>
    %7 = arith.maximumf %5, %6 : vector<16x512xf32>
    %8 = arith.truncf %7 : vector<16x512xf32> to vector<16x512xbf16>
    %c0_6 = arith.constant 0 : index
    %c0_7 = arith.constant 0 : index
    %9 = vector.load %arg4[%c0_6, %c0_7] : memref<512x256xbf16, #tpu.memory_space<vmem>>, vector<512x256xbf16>
    %cst_8 = arith.constant dense<0.000000e+00> : vector<16x256xf32>
    %10 = tpu.matmul %8, %9, %cst_8 {dimension_numbers = #tpu.dot_dimension_numbers<[1], [0], [0], [1], [0, 0, 1, 1], [], []>} : vector<16x512xbf16>, vector<512x256xbf16>, vector<16x256xf32> -> vector<16x256xf32>
    %c0_9 = arith.constant 0 : index
    %c0_10 = arith.constant 0 : index
    %11 = vector.load %arg5[%c0_9, %c0_10] : memref<1x256xf32, #tpu.memory_space<vmem>>, vector<1x256xf32>
    %12 = vector.broadcast %11 : vector<1x256xf32> to vector<16x256xf32>
    %13 = arith.addf %10, %12 : vector<16x256xf32>
    %cst_11 = arith.constant 0.000000e+00 : f32
    %14 = vector.broadcast %cst_11 : f32 to vector<16x256xf32>
    %15 = arith.maximumf %13, %14 : vector<16x256xf32>
    %16 = arith.truncf %15 : vector<16x256xf32> to vector<16x256xbf16>
    %c0_12 = arith.constant 0 : index
    %c0_13 = arith.constant 0 : index
    %17 = vector.load %arg6[%c0_12, %c0_13] : memref<256x256xbf16, #tpu.memory_space<vmem>>, vector<256x256xbf16>
    %cst_14 = arith.constant dense<0.000000e+00> : vector<16x256xf32>
    %18 = tpu.matmul %16, %17, %cst_14 {dimension_numbers = #tpu.dot_dimension_numbers<[1], [0], [0], [1], [0, 0, 1, 1], [], []>} : vector<16x256xbf16>, vector<256x256xbf16>, vector<16x256xf32> -> vector<16x256xf32>
    %c0_15 = arith.constant 0 : index
    %c0_16 = arith.constant 0 : index
    %19 = vector.load %arg7[%c0_15, %c0_16] : memref<1x256xf32, #tpu.memory_space<vmem>>, vector<1x256xf32>
    %20 = vector.broadcast %19 : vector<1x256xf32> to vector<16x256xf32>
    %21 = arith.addf %18, %20 : vector<16x256xf32>
    %cst_17 = arith.constant 0.000000e+00 : f32
    %22 = vector.broadcast %cst_17 : f32 to vector<16x256xf32>
    %23 = arith.maximumf %21, %22 : vector<16x256xf32>
    %24 = arith.truncf %23 : vector<16x256xf32> to vector<16x256xbf16>
    %c0_18 = arith.constant 0 : index
    %c0_19 = arith.constant 0 : index
    %25 = vector.load %arg8[%c0_18, %c0_19] : memref<256x256xbf16, #tpu.memory_space<vmem>>, vector<256x256xbf16>
    %cst_20 = arith.constant dense<0.000000e+00> : vector<16x256xf32>
    %26 = tpu.matmul %24, %25, %cst_20 {dimension_numbers = #tpu.dot_dimension_numbers<[1], [0], [0], [1], [0, 0, 1, 1], [], []>} : vector<16x256xbf16>, vector<256x256xbf16>, vector<16x256xf32> -> vector<16x256xf32>
    %c0_21 = arith.constant 0 : index
    %c0_22 = arith.constant 0 : index
    %27 = vector.load %arg9[%c0_21, %c0_22] : memref<1x256xf32, #tpu.memory_space<vmem>>, vector<1x256xf32>
    %28 = vector.broadcast %27 : vector<1x256xf32> to vector<16x256xf32>
    %29 = arith.addf %26, %28 : vector<16x256xf32>
    %cst_23 = arith.constant 0.000000e+00 : f32
    %30 = vector.broadcast %cst_23 : f32 to vector<16x256xf32>
    %31 = arith.maximumf %29, %30 : vector<16x256xf32>
    %32 = arith.truncf %31 : vector<16x256xf32> to vector<16x256xbf16>
    %c0_24 = arith.constant 0 : index
    %c0_25 = arith.constant 0 : index
    %33 = vector.load %arg10[%c0_24, %c0_25] : memref<256x256xbf16, #tpu.memory_space<vmem>>, vector<256x256xbf16>
    %cst_26 = arith.constant dense<0.000000e+00> : vector<16x256xf32>
    %34 = tpu.matmul %32, %33, %cst_26 {dimension_numbers = #tpu.dot_dimension_numbers<[1], [0], [0], [1], [0, 0, 1, 1], [], []>} : vector<16x256xbf16>, vector<256x256xbf16>, vector<16x256xf32> -> vector<16x256xf32>
    %c0_27 = arith.constant 0 : index
    %c0_28 = arith.constant 0 : index
    %35 = vector.load %arg11[%c0_27, %c0_28] : memref<1x256xf32, #tpu.memory_space<vmem>>, vector<1x256xf32>
    %36 = vector.broadcast %35 : vector<1x256xf32> to vector<16x256xf32>
    %37 = arith.addf %34, %36 : vector<16x256xf32>
    %cst_29 = arith.constant 0.000000e+00 : f32
    %38 = vector.broadcast %cst_29 : f32 to vector<16x256xf32>
    %39 = arith.maximumf %37, %38 : vector<16x256xf32>
    %40 = arith.truncf %39 : vector<16x256xf32> to vector<16x256xbf16>
    %c0_30 = arith.constant 0 : index
    %c0_31 = arith.constant 0 : index
    %41 = vector.load %arg12[%c0_30, %c0_31] : memref<256x256xbf16, #tpu.memory_space<vmem>>, vector<256x256xbf16>
    %cst_32 = arith.constant dense<0.000000e+00> : vector<16x256xf32>
    %42 = tpu.matmul %40, %41, %cst_32 {dimension_numbers = #tpu.dot_dimension_numbers<[1], [0], [0], [1], [0, 0, 1, 1], [], []>} : vector<16x256xbf16>, vector<256x256xbf16>, vector<16x256xf32> -> vector<16x256xf32>
    %c0_33 = arith.constant 0 : index
    %c0_34 = arith.constant 0 : index
    %43 = vector.load %arg13[%c0_33, %c0_34] : memref<1x256xf32, #tpu.memory_space<vmem>>, vector<1x256xf32>
    %44 = vector.broadcast %43 : vector<1x256xf32> to vector<16x256xf32>
    %45 = arith.addf %42, %44 : vector<16x256xf32>
    %cst_35 = arith.constant 0.000000e+00 : f32
    %46 = vector.broadcast %cst_35 : f32 to vector<16x256xf32>
    %47 = arith.maximumf %45, %46 : vector<16x256xf32>
    %48 = arith.truncf %47 : vector<16x256xf32> to vector<16x256xbf16>
    %c0_36 = arith.constant 0 : index
    %c0_37 = arith.constant 0 : index
    %49 = vector.load %arg14[%c0_36, %c0_37] : memref<256x128xbf16, #tpu.memory_space<vmem>>, vector<256x128xbf16>
    %cst_38 = arith.constant dense<0.000000e+00> : vector<16x128xf32>
    %50 = tpu.matmul %48, %49, %cst_38 {dimension_numbers = #tpu.dot_dimension_numbers<[1], [0], [0], [1], [0, 0, 1, 1], [], []>} : vector<16x256xbf16>, vector<256x128xbf16>, vector<16x128xf32> -> vector<16x128xf32>
    %c0_39 = arith.constant 0 : index
    %c0_40 = arith.constant 0 : index
    %51 = vector.load %arg15[%c0_39, %c0_40] : memref<1x128xf32, #tpu.memory_space<vmem>>, vector<1x128xf32>
    %52 = vector.broadcast %51 : vector<1x128xf32> to vector<16x128xf32>
    %53 = arith.addf %50, %52 : vector<16x128xf32>
    %54 = arith.truncf %53 : vector<16x128xf32> to vector<16x128xbf16>
    %c0_41 = arith.constant 0 : index
    %c0_42 = arith.constant 0 : index
    %55 = vector.load %arg16[%c0_41, %c0_42] : memref<16x128xbf16, #tpu.memory_space<vmem>>, vector<16x128xbf16>
    tpu.vector_store %arg16[%c0_41, %c0_42], %54 {strides = array<i32>} : memref<16x128xbf16, #tpu.memory_space<vmem>>, vector<16x128xbf16>,
    return
  }
  func.func @transform_0(%arg0: i32) -> (i32, i32) {
    %c0_i32 = arith.constant 0 : i32
    %c0_i32_0 = arith.constant 0 : i32
    return %arg0, %c0_i32 : i32, i32
  }
  func.func @transform_1(%arg0: i32) -> (i32, i32) {
    %c0_i32 = arith.constant 0 : i32
    %c0_i32_0 = arith.constant 0 : i32
    %c0_i32_1 = arith.constant 0 : i32
    return %c0_i32, %c0_i32_0 : i32, i32
  }
  func.func @transform_2(%arg0: i32) -> (i32, i32) {
    %c0_i32 = arith.constant 0 : i32
    %c0_i32_0 = arith.constant 0 : i32
    %c0_i32_1 = arith.constant 0 : i32
    return %c0_i32, %c0_i32_0 : i32, i32
  }
  func.func @transform_3(%arg0: i32) -> (i32, i32) {
    %c0_i32 = arith.constant 0 : i32
    %c0_i32_0 = arith.constant 0 : i32
    %c0_i32_1 = arith.constant 0 : i32
    return %c0_i32, %c0_i32_0 : i32, i32
  }
  func.func @transform_4(%arg0: i32) -> (i32, i32) {
    %c0_i32 = arith.constant 0 : i32
    %c0_i32_0 = arith.constant 0 : i32
    %c0_i32_1 = arith.constant 0 : i32
    return %c0_i32, %c0_i32_0 : i32, i32
  }
  func.func @transform_5(%arg0: i32) -> (i32, i32) {
    %c0_i32 = arith.constant 0 : i32
    %c0_i32_0 = arith.constant 0 : i32
    %c0_i32_1 = arith.constant 0 : i32
    return %c0_i32, %c0_i32_0 : i32, i32
  }
  func.func @transform_6(%arg0: i32) -> (i32, i32) {
    %c0_i32 = arith.constant 0 : i32
    %c0_i32_0 = arith.constant 0 : i32
    %c0_i32_1 = arith.constant 0 : i32
    return %c0_i32, %c0_i32_0 : i32, i32
  }
  func.func @transform_7(%arg0: i32) -> (i32, i32) {
    %c0_i32 = arith.constant 0 : i32
    %c0_i32_0 = arith.constant 0 : i32
    %c0_i32_1 = arith.constant 0 : i32
    return %c0_i32, %c0_i32_0 : i32, i32
  }
  func.func @transform_8(%arg0: i32) -> (i32, i32) {
    %c0_i32 = arith.constant 0 : i32
    %c0_i32_0 = arith.constant 0 : i32
    %c0_i32_1 = arith.constant 0 : i32
    return %c0_i32, %c0_i32_0 : i32, i32
  }
  func.func @transform_9(%arg0: i32) -> (i32, i32) {
    %c0_i32 = arith.constant 0 : i32
    %c0_i32_0 = arith.constant 0 : i32
    %c0_i32_1 = arith.constant 0 : i32
    return %c0_i32, %c0_i32_0 : i32, i32
  }
  func.func @transform_10(%arg0: i32) -> (i32, i32) {
    %c0_i32 = arith.constant 0 : i32
    %c0_i32_0 = arith.constant 0 : i32
    %c0_i32_1 = arith.constant 0 : i32
    return %c0_i32, %c0_i32_0 : i32, i32
  }
  func.func @transform_11(%arg0: i32) -> (i32, i32) {
    %c0_i32 = arith.constant 0 : i32
    %c0_i32_0 = arith.constant 0 : i32
    %c0_i32_1 = arith.constant 0 : i32
    return %c0_i32, %c0_i32_0 : i32, i32
  }
  func.func @transform_12(%arg0: i32) -> (i32, i32) {
    %c0_i32 = arith.constant 0 : i32
    %c0_i32_0 = arith.constant 0 : i32
    %c0_i32_1 = arith.constant 0 : i32
    return %c0_i32, %c0_i32_0 : i32, i32
  }
  func.func @transform_13(%arg0: i32) -> (i32, i32) {
    %c0_i32 = arith.constant 0 : i32
    %c0_i32_0 = arith.constant 0 : i32
    %c0_i32_1 = arith.constant 0 : i32
    return %c0_i32, %c0_i32_0 : i32, i32
  }
  func.func @transform_14(%arg0: i32) -> (i32, i32) {
    %c0_i32 = arith.constant 0 : i32
    %c0_i32_0 = arith.constant 0 : i32
    %c0_i32_1 = arith.constant 0 : i32
    return %c0_i32, %c0_i32_0 : i32, i32
  }
  func.func @transform_15(%arg0: i32) -> (i32, i32) {
    %c0_i32 = arith.constant 0 : i32
    %c0_i32_0 = arith.constant 0 : i32
    return %arg0, %c0_i32 : i32, i32
  }
}

</mosaic_0001>

<bundles_post_ra>
// kernel: dqn_forward.1
= control target key start
LH: loop header
LB: loop body
LE: loop exit
PB: predicated region body
PF: predicated region fallthrough
CT: control target
= control target key end

     0   :  { %20 = vsyncpa [#allocation3], 0  ;;  %s2890_s0 = inlined_call_operand.vmem [shape: bf16[16,16], index: 0, kind: input, shape index: {}]   ;;  %s2891_s1 = inlined_call_operand.hbm [shape: bf16[16,512], index: 1, kind: input, shape index: {}]   ;;  %s2892_s2 = inlined_call_operand.vmem [shape: f32[1,512], index: 2, kind: input, shape index: {}]   ;;  %s2893_s3 = inlined_call_operand.hbm [shape: bf16[512,256], index: 3, kind: input, shape index: {}]   ;;  %s2894_s4 = inlined_call_operand.vmem [shape: f32[1,256], index: 4, kind: input, shape index: {}]   ;;  %s2895_s5 = inlined_call_operand.hbm [shape: bf16[256,256], index: 5, kind: input, shape index: {}]   ;;  %s2896_s6 = inlined_call_operand.vmem [shape: f32[1,256], index: 6, kind: input, shape index: {}]   ;;  %s2897_s7 = inlined_call_operand.hbm [shape: bf16[256,256], index: 7, kind: input, shape index: {}]   ;;  %s2898_s8 = inlined_call_operand.vmem [shape: f32[1,256], index: 8, kind: input, shape index: {}]   ;;  %s2899_s9 = inlined_call_operand.hbm [shape: bf16[256,256], index: 9, kind: input, shape index: {}]   ;;  %s2900_s10 = inlined_call_operand.vmem [shape: f32[1,256], index: 10, kind: input, shape index: {}]   ;;  %s2901_s11 = inlined_call_operand.hbm [shape: bf16[256,256], index: 11, kind: input, shape index: {}]   ;;  %s2902_s12 = inlined_call_operand.vmem [shape: f32[1,256], index: 12, kind: input, shape index: {}]   ;;  %s2903_s13 = inlined_call_operand.hbm [shape: bf16[256,128], index: 13, kind: input, shape index: {}]   ;;  %s2904_s14 = inlined_call_operand.vmem [shape: f32[1,128], index: 14, kind: input, shape index: {}]   ;;  %s2905_s15 = inlined_call_operand.vmem [shape: bf16[16,128], index: 15, kind: output, shape index: {}]  }
   0x1   :  { %21 = vsyncpa [#allocation5], 0 }
   0x2   :  { %22 = vsyncpa [#allocation8], 0 }
   0x3   :  { %23 = vsyncpa [#allocation11], 0  ;;  %s2715_s18 = smov [#allocation4]  }
   0x4   :  { %s45_s19 = sshll.u32 %s2715_s18, 4  ;;  %s46_s19 = int_to_ptr.vmem [resolvable:$true] %s45_s19 }
   0x5   :  { %s2575_s20 = scalar_lea.vmem %s46_s19, 8192  ;;  %p2580_p1 = scmp.lt.s32.totalorder %s46_s19, %s46_s19 }
   0x6   :  { %p2576_p0 = scmp.ne.s32.totalorder %s46_s19, %s2575_s20  ;;  %p2581_p2 = scmp.lt.s32.totalorder %s2575_s20, %s2575_s20 }
   0x8   :  { %p2582_p3 = por %p2581_p2, %p2580_p1 }
   0xa   :  { %p2583_p4 = pnand %p2582_p3, %p2576_p0 }
   0xc   :  { %2586 = shalt.err (!%p2583_p4)
}
   0xd   :  { %s2716_s21 = smov 128   ;;  %s2717_s22 = smov 8  }
   0xe   :  { %51 = dma.hbm_to_vmem [thread:$0]  %s2893_s3, 8192, %s46_s19, [#allocation5], %s2716_s21, %s2716_s21, %s2717_s22  }
   0xf   :  { %s2718_s25 = smov [#allocation7]   ;;  %s2719_s27 = smov [#allocation10]  }
  0x10   :  { %s73_s26 = sshll.u32 %s2718_s25, 4  ;;  %s101_s28 = sshll.u32 %s2719_s27, 4  ;;  %s74_s26 = int_to_ptr.vmem [resolvable:$true] %s73_s26  ;;  %s102_s28 = int_to_ptr.vmem [resolvable:$true] %s101_s28 }
  0x11   :  { %s2595_s29 = scalar_lea.vmem %s74_s26, 4096  ;;  %p2600_p6 = scmp.lt.s32.totalorder %s74_s26, %s74_s26 }
  0x12   :  { %p2596_p5 = scmp.ne.s32.totalorder %s74_s26, %s2595_s29  ;;  %p2601_p7 = scmp.lt.s32.totalorder %s2595_s29, %s2595_s29 }
  0x14   :  { %p2602_p8 = por %p2601_p7, %p2600_p6 }
  0x16   :  { %p2603_p9 = pnand %p2602_p8, %p2596_p5 }
  0x18   :  { %2606 = shalt.err (!%p2603_p9)
}
  0x19   :  { %79 = dma.hbm_to_vmem [thread:$0]  %s2897_s7, 4096, %s74_s26, [#allocation8], %s2716_s21, %s2716_s21, %s2717_s22  }
  0x1a   :  { %s2615_s3 = scalar_lea.vmem %s102_s28, 4096  ;;  %p2620_p11 = scmp.lt.s32.totalorder %s102_s28, %s102_s28 }
  0x1b   :  { %p2616_p10 = scmp.ne.s32.totalorder %s102_s28, %s2615_s3  ;;  %p2621_p12 = scmp.lt.s32.totalorder %s2615_s3, %s2615_s3 }
  0x1d   :  { %p2622_p13 = por %p2621_p12, %p2620_p11 }
  0x1f   :  { %p2623_p0 = pnand %p2622_p13, %p2616_p10 }
  0x21   :  { %2626 = shalt.err (!%p2623_p0)
}
  0x22   :  { %107 = dma.hbm_to_vmem [thread:$0]  %s2901_s11, 4096, %s102_s28, [#allocation11], %s2716_s21, %s2716_s21, %s2717_s22  }
  0x23   :  { %s2720_s19 = smov [#allocation2]  }
  0x24   :  { %s31_s20 = sshll.u32 %s2720_s19, 4  ;;  %s32_s20 = int_to_ptr.vmem [resolvable:$true] %s31_s20 }
  0x25   :  { %s2635_s23 = scalar_lea.vmem %s32_s20, 512  ;;  %p2640_p2 = scmp.lt.s32.totalorder %s32_s20, %s32_s20 }
  0x26   :  { %p2636_p1 = scmp.ne.s32.totalorder %s32_s20, %s2635_s23  ;;  %p2641_p3 = scmp.lt.s32.totalorder %s2635_s23, %s2635_s23 }
  0x28   :  { %p2642_p4 = por %p2641_p3, %p2640_p2 }
  0x2a   :  { %p2643_p5 = pnand %p2642_p4, %p2636_p1 }
  0x2c   :  { %2646 = shalt.err (!%p2643_p5)
}
  0x2d   :  { %s2721_s7 = smov 256   ;;  %s2722_s24 = smov 16  }
  0x2e   :  { %37 = dma.hbm_to_vmem [thread:$0]  %s2891_s1, 512, %s32_s20, [#allocation3], %s2721_s7, %s2721_s7, %s2722_s24  }
  0x2f   :  { %s2723_s27 = smov [#allocation6]   ;;  %s2724_s30 = smov [#allocation9]  }
  0x30   :  { %s59_s29 = sshll.u32 %s2723_s27, 4  ;;  %s87_s11 = sshll.u32 %s2724_s30, 4  ;;  %s60_s29 = int_to_ptr.vmem [resolvable:$true] %s59_s29  ;;  %s88_s11 = int_to_ptr.vmem [resolvable:$true] %s87_s11 }
  0x31   :  { %s2655_s28 = scalar_lea.vmem %s60_s29, 4096  ;;  %p2660_p7 = scmp.lt.s32.totalorder %s60_s29, %s60_s29 }
  0x32   :  { %p2656_p6 = scmp.ne.s32.totalorder %s60_s29, %s2655_s28  ;;  %p2661_p8 = scmp.lt.s32.totalorder %s2655_s28, %s2655_s28 }
  0x34   :  { %p2662_p9 = por %p2661_p8, %p2660_p7 }
  0x36   :  { %p2663_p10 = pnand %p2662_p9, %p2656_p6 }
  0x38   :  { %2666 = shalt.err (!%p2663_p10)
}
  0x39   :  { %65 = dma.hbm_to_vmem [thread:$0]  %s2895_s5, 4096, %s60_s29, [#allocation5], %s2716_s21, %s2716_s21, %s2717_s22  }
  0x3a   :  { %s2675_s1 = scalar_lea.vmem %s88_s11, 4096  ;;  %p2680_p12 = scmp.lt.s32.totalorder %s88_s11, %s88_s11 }
  0x3b   :  { %p2676_p11 = scmp.ne.s32.totalorder %s88_s11, %s2675_s1  ;;  %p2681_p13 = scmp.lt.s32.totalorder %s2675_s1, %s2675_s1 }
  0x3d   :  { %p2682_p0 = por %p2681_p13, %p2680_p12 }
  0x3f   :  { %p2683_p1 = pnand %p2682_p0, %p2676_p11 }
  0x41   :  { %2686 = shalt.err (!%p2683_p1)
}
  0x42   :  { %93 = dma.hbm_to_vmem [thread:$0]  %s2899_s9, 4096, %s88_s11, [#allocation8], %s2716_s21, %s2716_s21, %s2717_s22  }
  0x43   :  { %s2725_s19 = smov [#allocation12]  }
  0x44   :  { %s115_s20 = sshll.u32 %s2725_s19, 4  ;;  %s116_s20 = int_to_ptr.vmem [resolvable:$true] %s115_s20 }
  0x45   :  { %s2695_s23 = scalar_lea.vmem %s116_s20, 2048  ;;  %p2700_p3 = scmp.lt.s32.totalorder %s116_s20, %s116_s20 }
  0x46   :  { %p2696_p2 = scmp.ne.s32.totalorder %s116_s20, %s2695_s23  ;;  %p2701_p4 = scmp.lt.s32.totalorder %s2695_s23, %s2695_s23 }
  0x48   :  { %p2702_p5 = por %p2701_p4, %p2700_p3 }
  0x4a   :  { %p2703_p6 = pnand %p2702_p5, %p2696_p2 }
  0x4c   :  { %2706 = shalt.err (!%p2703_p6)
}
  0x4d   :  { %s2726_s5 = smov 64   ;;  %s2727_s7 = smov 4  }
  0x4e   :  { %121 = dma.hbm_to_vmem [thread:$0]  %s2903_s13, 2048, %s116_s20, [#allocation11], %s2726_s5, %s2726_s5, %s2727_s7  }
  0x4f   :  { %2707 = dma.done.wait [#allocation3], 512  }
  0x50   :  { %2708 = vsyncadd [#allocation3], 4294966784 }
  0x51   :  { %2709 = dma.done.wait [#allocation5], 12288  }
  0x52   :  { %2710 = vsyncadd [#allocation5], 4294955008 }
  0x53   :  { %2711 = dma.done.wait [#allocation8], 8192  }
  0x54   :  { %2712 = vsyncadd [#allocation8], 4294959104 }
  0x55   :  { %2713 = dma.done.wait [#allocation11], 6144  }
  0x56   :  { %2714 = vsyncadd [#allocation11], 4294961152  ;;  %v2728_v0 = vmov 0   ;;  %v2256_v1 = vld [vmem:[#allocation2 + $0x4] ss:$16 sps:$4 sm:$0xff]   ;;  %vm199_vm0 = vcmask 130048  }
  0x57   :  { %235 = vmatprep.mubr.bf16.mxu1 %v2728_v0  ;;  %v2258_v2 = vld [vmem:[#allocation2] ss:$16 sps:$4 sm:$0xff]   ;;  %217 = vmatprep.subr.bf16.mxu1 %v2256_v1  ;;  %v2260_v4 = vld [vmem:[#allocation2 + $0x8] ss:$16 sps:$4 sm:$0xff]   ;;  %v2262_v5 = vld [vmem:[#allocation2 + $0xc] ss:$16 sps:$4 sm:$0xff]  }
  0x58   :  { %v2259_v3 = vld [vmem:[%s2890_s0] sm:$0xff]   ;;  %218 = vmatpush1.bf16.msra.mxu1 %v2258_v2  ;;  %v2263_v6 = vld [vmem:[#allocation4 + $0x74] ss:$8 sps:$4 sm:$0xff]   ;;  %v2265_v7 = vld [vmem:[#allocation4 + $0x70] ss:$8 sps:$4 sm:$0xff]  }
  0x59   :  { %260 = vmatprep.subr.bf16.mxu1 %v2262_v5  ;;  %v2266_v8 = vld [vmem:[#allocation4 + $0x64] ss:$8 sps:$4 sm:$0xff]   ;;  %697 = vmatprep.subr.bf16.mxu0 %v2263_v6  ;;  %v2268_v9 = vld [vmem:[#allocation4 + $0x60] ss:$8 sps:$4 sm:$0xff]   ;;  %v2273_v10 = vld [vmem:[#allocation4 + $0x174] ss:$8 sps:$4 sm:$0xff]  }
  0x5a   :  { %698 = vmatpush1.bf16.msra.mxu0 %v2265_v7  ;;  %v2269_v11 = vld [vmem:[#allocation4 + $0x54] ss:$8 sps:$4 sm:$0xff]   ;;  %v2271_v12 = vld [vmem:[#allocation4 + $0x170] ss:$8 sps:$4 sm:$0xff]   ;;  %v2279_v14 = vld [vmem:[#allocation4 + $0x164] ss:$8 sps:$4 sm:$0xff]   ;;  %v154_v7 = vlaneseq }
  0x5b   :  { %2000 = vmatmul.mubr.msk.bf16.vlgmr.msra.gmra.mxu1 %vm199_vm0, %v2259_v3  ;;  %699 = vmatprep.subr.bf16.mxu0 %v2266_v8  ;;  %v2274_v13 = vld [vmem:[#allocation4 + $0x50] ss:$8 sps:$4 sm:$0xff]   ;;  %v2275_v15 = vld [vmem:[#allocation4 + $0x44] ss:$8 sps:$4 sm:$0xff]   ;;  %v2277_v16 = vld [vmem:[#allocation4 + $0x160] ss:$8 sps:$4 sm:$0xff]  }
  0x5c   :  { %261 = vmatpush1.bf16.msra.mxu1 %v2260_v4  ;;  %278 = vmatprep.mubr.bf16.mxu1 %v2728_v0  ;;  %v2280_v17 = vld [vmem:[#allocation4 + $0x40] ss:$8 sps:$4 sm:$0xff]   ;;  %v2285_v18 = vld [vmem:[#allocation4 + $0x154] ss:$8 sps:$4 sm:$0xff]   ;;  %v2283_v20 = vld [vmem:[#allocation4 + $0x150] ss:$8 sps:$4 sm:$0xff]  }
  0x5d   :  { %740 = vmatprep.subr.bf16.mxu1 %v2273_v10  ;;  %v2281_v19 = vld [vmem:[#allocation4 + $0x34] ss:$8 sps:$4 sm:$0xff]   ;;  %v2286_v21 = vld [vmem:[#allocation4 + $0x30] ss:$8 sps:$4 sm:$0xff]   ;;  %v2291_v22 = vld [vmem:[#allocation4 + $0x144] ss:$8 sps:$4 sm:$0xff]  }
  0x5e   :  { %700 = vmatpush1.bf16.msra.mxu0 %v2268_v9  ;;  %v2287_v23 = vld [vmem:[#allocation4 + $0x24] ss:$8 sps:$4 sm:$0xff]   ;;  %v2289_v24 = vld [vmem:[#allocation4 + $0x140] ss:$8 sps:$4 sm:$0xff]   ;;  %v2297_v26 = vld [vmem:[#allocation4 + $0x134] ss:$8 sps:$4 sm:$0xff]  }
  0x5f   :  { %701 = vmatprep.subr.bf16.mxu0 %v2269_v11  ;;  %v2292_v25 = vld [vmem:[#allocation4 + $0x20] ss:$8 sps:$4 sm:$0xff]   ;;  %v2293_v27 = vld [vmem:[#allocation4 + $0x14] ss:$8 sps:$4 sm:$0xff]   ;;  %v2295_v28 = vld [vmem:[#allocation4 + $0x130] ss:$8 sps:$4 sm:$0xff]  }
  0x60   :  { %v2298_v29 = vld [vmem:[#allocation4 + $0x10] ss:$8 sps:$4 sm:$0xff]   ;;  %v2303_v30 = vld [vmem:[#allocation4 + $0x124] ss:$8 sps:$4 sm:$0xff]   ;;  %v2301_v32 = vld [vmem:[#allocation4 + $0x120] ss:$8 sps:$4 sm:$0xff]  }
  0x61   :  { %v2299_v31 = vld [vmem:[#allocation4 + $0x4] ss:$8 sps:$4 sm:$0xff]   ;;  %v2304_v33 = vld [vmem:[#allocation4] ss:$8 sps:$4 sm:$0xff]   ;;  %v2309_v34 = vld [vmem:[#allocation4 + $0x114] ss:$8 sps:$4 sm:$0xff]  }
  0x62   :  { %702 = vmatpush1.bf16.msra.mxu0 %v2274_v13  ;;  %v2305_v35 = vld [vmem:[#allocation4 + $0xf4] ss:$8 sps:$4 sm:$0xff]   ;;  %v2307_v36 = vld [vmem:[#allocation4 + $0x110] ss:$8 sps:$4 sm:$0xff]   ;;  %v2311_v38 = vld [vmem:[#allocation4 + $0xe4] ss:$8 sps:$4 sm:$0xff]  }
  0x63   :  { %2001 = vmatmul.mubr.msk.bf16.vlgmr.msra.gmra.mxu1 %vm199_vm0, %v2259_v3  ;;  %703 = vmatprep.subr.bf16.mxu0 %v2275_v15  ;;  %v2310_v37 = vld [vmem:[#allocation4 + $0xf0] ss:$8 sps:$4 sm:$0xff]   ;;  %v2315_v39 = vld [vmem:[#allocation4 + $0x104] ss:$8 sps:$4 sm:$0xff]   ;;  %v2313_v40 = vld [vmem:[#allocation4 + $0x100] ss:$8 sps:$4 sm:$0xff]  }
  0x64   :  { %741 = vmatpush1.bf16.msra.mxu1 %v2271_v12  ;;  %v2316_v41 = vld [vmem:[#allocation4 + $0xe0] ss:$8 sps:$4 sm:$0xff]   ;;  %v2321_v42 = vld [vmem:[#allocation4 + $0x1f4] ss:$8 sps:$4 sm:$0xff]   ;;  %v2319_v44 = vld [vmem:[#allocation4 + $0x1f0] ss:$8 sps:$4 sm:$0xff]  }
  0x65   :  { %742 = vmatprep.subr.bf16.mxu1 %v2279_v14  ;;  %v2317_v43 = vld [vmem:[#allocation4 + $0xd4] ss:$8 sps:$4 sm:$0xff]   ;;  %v2322_v45 = vld [vmem:[#allocation4 + $0xd0] ss:$8 sps:$4 sm:$0xff]   ;;  %v2327_v46 = vld [vmem:[#allocation4 + $0x1e4] ss:$8 sps:$4 sm:$0xff]  }
  0x66   :  { %704 = vmatpush1.bf16.msra.mxu0 %v2280_v17  ;;  %v2323_v47 = vld [vmem:[#allocation4 + $0xc4] ss:$8 sps:$4 sm:$0xff]   ;;  %v2325_v48 = vld [vmem:[#allocation4 + $0x1e0] ss:$8 sps:$4 sm:$0xff]   ;;  %v2333_v50 = vld [vmem:[#allocation4 + $0x1d4] ss:$8 sps:$4 sm:$0xff]  }
  0x67   :  { %705 = vmatprep.subr.bf16.mxu0 %v2281_v19  ;;  %v2328_v49 = vld [vmem:[#allocation4 + $0xc0] ss:$8 sps:$4 sm:$0xff]   ;;  %v2329_v51 = vld [vmem:[#allocation4 + $0xb4] ss:$8 sps:$4 sm:$0xff]   ;;  %v2331_v52 = vld [vmem:[#allocation4 + $0x1d0] ss:$8 sps:$4 sm:$0xff]  }
  0x68   :  { %743 = vmatpush1.bf16.msra.mxu1 %v2277_v16  ;;  %v2334_v53 = vld [vmem:[#allocation4 + $0xb0] ss:$8 sps:$4 sm:$0xff]   ;;  %v2335_v54 = vld [vmem:[#allocation4 + $0xa4] ss:$8 sps:$4 sm:$0xff]   ;;  %v2337_v56 = vld [vmem:[#allocation4 + $0x1c0] ss:$8 sps:$4 sm:$0xff]  }
  0x69   :  { %744 = vmatprep.subr.bf16.mxu1 %v2285_v18  ;;  %v2339_v55 = vld [vmem:[#allocation4 + $0x1c4] ss:$8 sps:$4 sm:$0xff]   ;;  %v2340_v57 = vld [vmem:[#allocation4 + $0xa0] ss:$8 sps:$4 sm:$0xff]   ;;  %v2341_v58 = vld [vmem:[#allocation4 + $0x94] ss:$8 sps:$4 sm:$0xff]  }
  0x6a   :  { %706 = vmatpush1.bf16.msra.mxu0 %v2286_v21  ;;  %v2345_v59 = vld [vmem:[#allocation4 + $0x1b4] ss:$8 sps:$4 sm:$0xff]   ;;  %v2343_v60 = vld [vmem:[#allocation4 + $0x1b0] ss:$8 sps:$4 sm:$0xff]   ;;  %v2347_v62 = vld [vmem:[#allocation4 + $0x84] ss:$8 sps:$4 sm:$0xff]  }
  0x6b   :  { %707 = vmatprep.subr.bf16.mxu0 %v2287_v23  ;;  %v2346_v61 = vld [vmem:[#allocation4 + $0x90] ss:$8 sps:$4 sm:$0xff]   ;;  %v2351_v63 = vld [vmem:[#allocation4 + $0x1a4] ss:$8 sps:$4 sm:$0xff]   ;;  %v2349_v0 = vld [vmem:[#allocation4 + $0x1a0] ss:$8 sps:$4 sm:$0xff]  }
  0x6c   :  { %745 = vmatpush1.bf16.msra.mxu1 %v2283_v20  ;;  %v2352_v1 = vld [vmem:[#allocation4 + $0x80] ss:$8 sps:$4 sm:$0xff]   ;;  %v2355_v2 = vld [vmem:[#allocation4 + $0x194] ss:$8 sps:$4 sm:$0xff]   ;;  %v2353_v3 = vld [vmem:[#allocation4 + $0x190] ss:$8 sps:$4 sm:$0xff]  }
  0x6d   :  { %746 = vmatprep.subr.bf16.mxu1 %v2291_v22  ;;  %v2358_v4 = vld [vmem:[#allocation4 + $0x184] ss:$8 sps:$4 sm:$0xff]   ;;  %v2356_v5 = vld [vmem:[#allocation4 + $0x180] ss:$8 sps:$4 sm:$0xff]   ;;  %v2361_v6 = vld [vmem:[#allocation6 + $0x74] ss:$8 sps:$4 sm:$0xff]  }
  0x6e   :  { %708 = vmatpush1.bf16.msra.mxu0 %v2292_v25  ;;  %v155_v8 = vshrl.u32 %v154_v7, 7  ;;  %v152_v11 = vld [vmem:[%s2892_s2] sm:$0xf]  ;;  %v2400_v7 = vld [vmem:[#allocation6 + $0xa4] ss:$8 sps:$4 sm:$0xff]  }
  0x6f   :  { %709 = vmatprep.subr.bf16.mxu0 %v2293_v27 }
  0x70   :  { %747 = vmatpush1.bf16.msra.mxu1 %v2289_v24  ;;  %v2850_v9 = vsub.s32 1, %v155_v8  ;;  %v2852_v10 = vsub.s32 0, %v155_v8  ;;  %v168_v19 = vsub.s32 3, %v155_v8  ;;  %v164_v22 = vsub.s32 2, %v155_v8  ;;  %v2398_v8 = vld [vmem:[#allocation6 + $0xa0] ss:$8 sps:$4 sm:$0xff]  }
  0x71   :  { %748 = vmatprep.subr.bf16.mxu1 %v2297_v26 }
  0x72   :  { %710 = vmatpush1.bf16.msra.mxu0 %v2298_v29  ;;  %v161_v13 = vrot.slane %v152_v11, %v2850_v9  ;;  %v157_v14 = vrot.slane %v152_v11, %v2852_v10 }
  0x73   :  { %711 = vmatprep.subr.bf16.mxu0 %v2299_v31 }
  0x74   :  { %749 = vmatpush1.bf16.msra.mxu1 %v2295_v28  ;;  %v169_v28 = vrot.slane %v152_v11, %v168_v19  ;;  %v2415_v19 = vld [vmem:[#allocation7 + $0x54] ss:$8 sps:$4 sm:$0xff]  }
  0x75   :  { %750 = vmatprep.subr.bf16.mxu1 %v2303_v30  ;;  %v165_v30 = vrot.slane %v152_v11, %v164_v22  ;;  %v2403_v11 = vld [vmem:[#allocation6 + $0x94] ss:$8 sps:$4 sm:$0xff]   ;;  %v2416_v22 = vld [vmem:[#allocation7 + $0x40] ss:$8 sps:$4 sm:$0xff]  }
  0x76   :  { %712 = vmatpush1.bf16.msra.mxu0 %v2304_v33  ;;  %v2359_v33 = vld [vmem:[#allocation6 + $0x70] ss:$8 sps:$4 sm:$0xff]  }
  0x77   :  { %713 = vmatprep.subr.bf16.mxu0 %v2305_v35 }
  0x78   :  { %751 = vmatpush1.bf16.msra.mxu1 %v2301_v32 }
  0x79   :  { %752 = vmatprep.subr.bf16.mxu1 %v2309_v34 }
  0x7a   :  { %714 = vmatpush2.bf16.msra.mxu0 %v2310_v37 }
  0x7b   :  { %715 = vmatprep.subr.bf16.mxu0 %v2311_v38 }
  0x7c   :  { %753 = vmatpush1.bf16.msra.mxu1 %v2307_v36  ;;  %v2364_v36 = vld [vmem:[#allocation6 + $0x64] ss:$8 sps:$4 sm:$0xff]  }
  0x7d   :  { %754 = vmatprep.subr.bf16.mxu1 %v2315_v39 }
  0x7e   :  { %716 = vmatpush2.bf16.msra.mxu0 %v2316_v41 }
  0x7f   :  { %717 = vmatprep.subr.bf16.mxu0 %v2317_v43 }
  0x80   :  { %755 = vmatpush1.bf16.msra.mxu1 %v2313_v40 }
  0x81   :  { %756 = vmatprep.subr.bf16.mxu1 %v2321_v42  ;;  %v2362_v42 = vld [vmem:[#allocation6 + $0x60] ss:$8 sps:$4 sm:$0xff]  }
  0x82   :  { %718 = vmatpush2.bf16.msra.mxu0 %v2322_v45 }
  0x83   :  { %719 = vmatprep.subr.bf16.mxu0 %v2323_v47 }
  0x84   :  { %757 = vmatpush2.bf16.msra.mxu1 %v2319_v44  ;;  %v2367_v44 = vld [vmem:[#allocation6 + $0x54] ss:$8 sps:$4 sm:$0xff]  }
  0x85   :  { %758 = vmatprep.subr.bf16.mxu1 %v2327_v46 }
  0x86   :  { %720 = vmatpush2.bf16.msra.mxu0 %v2328_v49  ;;  %v2365_v49 = vld [vmem:[#allocation6 + $0x50] ss:$8 sps:$4 sm:$0xff]  }
  0x87   :  { %721 = vmatprep.subr.bf16.mxu0 %v2329_v51  ;;  %v2370_v51 = vld [vmem:[#allocation6 + $0x44] ss:$8 sps:$4 sm:$0xff]  }
  0x88   :  { %759 = vmatpush2.bf16.msra.mxu1 %v2325_v48 }
  0x89   :  { %760 = vmatprep.subr.bf16.mxu1 %v2333_v50 }
  0x8a   :  { %722 = vmatpush2.bf16.msra.mxu0 %v2334_v53  ;;  %v2373_v53 = vld [vmem:[#allocation6 + $0x34] ss:$8 sps:$4 sm:$0xff]  }
  0x8b   :  { %723 = vmatprep.subr.bf16.mxu0 %v2335_v54  ;;  %v2371_v54 = vld [vmem:[#allocation6 + $0x30] ss:$8 sps:$4 sm:$0xff]  }
  0x8c   :  { %761 = vmatpush2.bf16.msra.mxu1 %v2331_v52  ;;  %v2368_v52 = vld [vmem:[#allocation6 + $0x40] ss:$8 sps:$4 sm:$0xff]  }
  0x8d   :  { %762 = vmatprep.subr.bf16.mxu1 %v2339_v55  ;;  %v2376_v55 = vld [vmem:[#allocation6 + $0x24] ss:$8 sps:$4 sm:$0xff]  }
  0x8e   :  { %724 = vmatpush2.bf16.msra.mxu0 %v2340_v57  ;;  %v2379_v57 = vld [vmem:[#allocation6 + $0x14] ss:$8 sps:$4 sm:$0xff]  }
  0x8f   :  { %725 = vmatprep.subr.bf16.mxu0 %v2341_v58  ;;  %v2377_v58 = vld [vmem:[#allocation6 + $0x10] ss:$8 sps:$4 sm:$0xff]  }
  0x90   :  { %763 = vmatpush2.bf16.msra.mxu1 %v2337_v56  ;;  %v2374_v56 = vld [vmem:[#allocation6 + $0x20] ss:$8 sps:$4 sm:$0xff]  }
  0x91   :  { %764 = vmatprep.subr.bf16.mxu1 %v2345_v59  ;;  %v2382_v59 = vld [vmem:[#allocation6 + $0x4] ss:$8 sps:$4 sm:$0xff]  }
  0x92   :  { %726 = vmatpush2.bf16.msra.mxu0 %v2346_v61  ;;  %v2385_v61 = vld [vmem:[#allocation6 + $0xf4] ss:$8 sps:$4 sm:$0xff]  }
  0x93   :  { %727 = vmatprep.subr.bf16.mxu0 %v2347_v62  ;;  %v2383_v62 = vld [vmem:[#allocation6 + $0xf0] ss:$8 sps:$4 sm:$0xff]  }
  0x94   :  { %765 = vmatpush2.bf16.msra.mxu1 %v2343_v60  ;;  %v2380_v60 = vld [vmem:[#allocation6] ss:$8 sps:$4 sm:$0xff]  }
  0x95   :  { %766 = vmatprep.subr.bf16.mxu1 %v2351_v63  ;;  %v2388_v63 = vld [vmem:[#allocation6 + $0xe4] ss:$8 sps:$4 sm:$0xff]  }
  0x96   :  { %728 = vmatpush2.bf16.msra.mxu0 %v2352_v1  ;;  %v2391_v1 = vld [vmem:[#allocation6 + $0xd4] ss:$8 sps:$4 sm:$0xff]  }
  0x97   :  { %993 = vmatprep.subr.bf16.mxu0 %v2361_v6  ;;  %v2395_v6 = vld [vmem:[#allocation6 + $0xb0] ss:$8 sps:$4 sm:$0xff]  }
  0x98   :  { %767 = vmatpush2.bf16.msra.mxu1 %v2349_v0  ;;  %v2386_v0 = vld [vmem:[#allocation6 + $0xe0] ss:$8 sps:$4 sm:$0xff]  }
  0x99   :  { %768 = vmatprep.subr.bf16.mxu1 %v2355_v2  ;;  %v2389_v2 = vld [vmem:[#allocation6 + $0xd0] ss:$8 sps:$4 sm:$0xff]  }
  0x9c   :  { %769 = vmatpush2.bf16.msra.mxu1 %v2353_v3  ;;  %v2394_v3 = vld [vmem:[#allocation6 + $0xc4] ss:$8 sps:$4 sm:$0xff]  }
  0x9d   :  { %770 = vmatprep.subr.bf16.mxu1 %v2358_v4  ;;  %v2392_v4 = vld [vmem:[#allocation6 + $0xc0] ss:$8 sps:$4 sm:$0xff]  }
  0xa0   :  { %771 = vmatpush2.bf16.msra.mxu1 %v2356_v5  ;;  %v2397_v5 = vld [vmem:[#allocation6 + $0xb4] ss:$8 sps:$4 sm:$0xff]  }
 0x11b   :  { %v237_v12 = vpop.f32.mrf.mxu1 }
 0x11c   :  { %v238_v20 = vadd.f32 %v237_v12, %v157_v14  ;;  %v2401_v12 = vld [vmem:[#allocation6 + $0x90] ss:$8 sps:$4 sm:$0xff]  }
 0x11d   :  { %v239_v15 = vpop.f32.mrf.mxu1 }
 0x11e   :  { %v240_v17 = vadd.f32 %v239_v15, %v161_v13  ;;  %v289_v29 = vmax.f32 %v238_v20, 0.0  ;;  %v2407_v15 = vld [vmem:[#allocation7 + $0x70] ss:$8 sps:$4 sm:$0xff]  }
 0x11f   :  { %v241_v16 = vpop.f32.mrf.mxu1  ;;  %v2413_v20 = vld [vmem:[#allocation7 + $0x50] ss:$8 sps:$4 sm:$0xff]  }
 0x120   :  { %v242_v18 = vadd.f32 %v241_v16, %v157_v14  ;;  %v290_v26 = vmax.f32 %v240_v17, 0.0  ;;  %v2404_v14 = vld [vmem:[#allocation6 + $0x80] ss:$8 sps:$4 sm:$0xff]   ;;  %v2409_v16 = vld [vmem:[#allocation7 + $0x74] ss:$8 sps:$4 sm:$0xff]  }
 0x121   :  { %v243_v21 = vpop.f32.mrf.mxu1  ;;  %v2412_v17 = vld [vmem:[#allocation7 + $0x64] ss:$8 sps:$4 sm:$0xff]   ;;  %1246 = vmatprep.subr.bf16.mxu1 %v2409_v16 }
 0x122   :  { %v244_v23 = vadd.f32 %v243_v21, %v161_v13  ;;  %v293_v24 = vmax.f32 %v242_v18, 0.0  ;;  %v2406_v13 = vld [vmem:[#allocation6 + $0x84] ss:$8 sps:$4 sm:$0xff]   ;;  %v2410_v18 = vld [vmem:[#allocation7 + $0x60] ss:$8 sps:$4 sm:$0xff]  }
 0x123   :  { %v280_v25 = vpop.f32.mrf.mxu1  ;;  %v2418_v21 = vld [vmem:[#allocation7 + $0x44] ss:$8 sps:$4 sm:$0xff]  }
 0x124   :  { %v294_v27 = vmax.f32 %v244_v23, 0.0  ;;  %v297_v34 = vpack.c.bf16 %v293_v24, %v289_v29  ;;  %v281_v39 = vadd.f32 %v280_v25, %v165_v30  ;;  %v2421_v23 = vld [vmem:[#allocation7 + $0x34] ss:$8 sps:$4 sm:$0xff]   ;;  %v2419_v24 = vld [vmem:[#allocation7 + $0x30] ss:$8 sps:$4 sm:$0xff]  }
 0x125   :  { %v282_v31 = vpop.f32.mrf.mxu1  ;;  %v2424_v25 = vld [vmem:[#allocation7 + $0x24] ss:$8 sps:$4 sm:$0xff]  }
 0x126   :  { %v298_v32 = vpack.c.bf16 %v294_v27, %v290_v26  ;;  %v283_v37 = vadd.f32 %v282_v31, %v169_v28  ;;  %v291_v47 = vmax.f32 %v281_v39, 0.0  ;;  %v2422_v26 = vld [vmem:[#allocation7 + $0x20] ss:$8 sps:$4 sm:$0xff]   ;;  %v2427_v27 = vld [vmem:[#allocation7 + $0x14] ss:$8 sps:$4 sm:$0xff]  }
 0x127   :  { %v284_v35 = vpop.f32.mrf.mxu1  ;;  %v2430_v29 = vld [vmem:[#allocation7 + $0x4] ss:$8 sps:$4 sm:$0xff]   ;;  %v2433_v31 = vld [vmem:[#allocation7 + $0xf4] ss:$8 sps:$4 sm:$0xff]  }
 0x128   :  { %v285_v38 = vadd.f32 %v284_v35, %v165_v30  ;;  %729 = vmatprep.mubr.bf16.mxu0 %v298_v32  ;;  %v292_v45 = vmax.f32 %v283_v37, 0.0  ;;  %v2428_v30 = vld [vmem:[#allocation7] ss:$8 sps:$4 sm:$0xff]   ;;  %v2431_v32 = vld [vmem:[#allocation7 + $0xf0] ss:$8 sps:$4 sm:$0xff]  }
 0x129   :  { %v286_v40 = vpop.f32.mrf.mxu1  ;;  %730 = vmatmul.mubr.bf16.vlgmr.msra.gmra.mxu0 %v297_v34  ;;  %v2434_v34 = vld [vmem:[#allocation7 + $0xe0] ss:$8 sps:$4 sm:$0xff]   ;;  %v2439_v35 = vld [vmem:[#allocation7 + $0xd4] ss:$8 sps:$4 sm:$0xff]   ;;  %v2442_v37 = vld [vmem:[#allocation7 + $0xc4] ss:$8 sps:$4 sm:$0xff]  }
 0x12a   :  { %v287_v41 = vadd.f32 %v286_v40, %v169_v28  ;;  %994 = vmatpush1.bf16.msra.mxu0 %v2359_v33  ;;  %v295_v43 = vmax.f32 %v285_v38, 0.0  ;;  %v2425_v28 = vld [vmem:[#allocation7 + $0x10] ss:$8 sps:$4 sm:$0xff]   ;;  %v2436_v33 = vld [vmem:[#allocation7 + $0xe4] ss:$8 sps:$4 sm:$0xff]  }
 0x12b   :  { %995 = vmatprep.subr.bf16.mxu0 %v2364_v36  ;;  %v2437_v36 = vld [vmem:[#allocation7 + $0xd0] ss:$8 sps:$4 sm:$0xff]   ;;  %v2440_v38 = vld [vmem:[#allocation7 + $0xc0] ss:$8 sps:$4 sm:$0xff]   ;;  %v2445_v39 = vld [vmem:[#allocation7 + $0xb4] ss:$8 sps:$4 sm:$0xff]  }
 0x12c   :  { %v296_v46 = vmax.f32 %v287_v41, 0.0  ;;  %v299_v50 = vpack.c.bf16 %v295_v43, %v291_v47  ;;  %v2443_v40 = vld [vmem:[#allocation7 + $0xb0] ss:$8 sps:$4 sm:$0xff]   ;;  %v365_v43 = vld [vmem:[%s2894_s4] sm:$0x3] }
 0x12d   :  { %v2466_v16 = vld [vmem:[#allocation9 + $0x44] ss:$8 sps:$4 sm:$0xff]  }
 0x12e   :  { %v300_v48 = vpack.c.bf16 %v296_v46, %v292_v45  ;;  %996 = vmatpush1.bf16.msra.mxu0 %v2362_v42  ;;  %v374_v45 = vrot.slane %v365_v43, %v2850_v9  ;;  %v370_v46 = vrot.slane %v365_v43, %v2852_v10 }
 0x12f   :  { %997 = vmatprep.subr.bf16.mxu0 %v2367_v44 }
 0x130   :  { %772 = vmatprep.mubr.bf16.mxu1 %v300_v48 }
 0x131   :  { %773 = vmatmul.mubr.bf16.vlgmr.msra.gmra.mxu1 %v299_v50 }
 0x132   :  { %998 = vmatpush1.bf16.msra.mxu0 %v2365_v49  ;;  %1247 = vmatpush1.bf16.msra.mxu1 %v2407_v15  ;;  %v2461_v15 = vld [vmem:[#allocation9 + $0x50] ss:$8 sps:$4 sm:$0xff]  }
 0x133   :  { %999 = vmatprep.subr.bf16.mxu0 %v2370_v51  ;;  %1248 = vmatprep.subr.bf16.mxu1 %v2412_v17  ;;  %v2464_v17 = vld [vmem:[#allocation9 + $0x40] ss:$8 sps:$4 sm:$0xff]  }
 0x136   :  { %1000 = vmatpush1.bf16.msra.mxu0 %v2368_v52  ;;  %1249 = vmatpush1.bf16.msra.mxu1 %v2410_v18  ;;  %v2469_v18 = vld [vmem:[#allocation9 + $0x34] ss:$8 sps:$4 sm:$0xff]  }
 0x137   :  { %1001 = vmatprep.subr.bf16.mxu0 %v2373_v53  ;;  %1250 = vmatprep.subr.bf16.mxu1 %v2415_v19  ;;  %v2467_v19 = vld [vmem:[#allocation9 + $0x30] ss:$8 sps:$4 sm:$0xff]  }
 0x13a   :  { %1002 = vmatpush1.bf16.msra.mxu0 %v2371_v54  ;;  %1251 = vmatpush1.bf16.msra.mxu1 %v2413_v20  ;;  %v2472_v20 = vld [vmem:[#allocation9 + $0x24] ss:$8 sps:$4 sm:$0xff]  }
 0x13b   :  { %1003 = vmatprep.subr.bf16.mxu0 %v2376_v55  ;;  %1252 = vmatprep.subr.bf16.mxu1 %v2418_v21  ;;  %v2470_v21 = vld [vmem:[#allocation9 + $0x20] ss:$8 sps:$4 sm:$0xff]  }
 0x13e   :  { %1004 = vmatpush1.bf16.msra.mxu0 %v2374_v56  ;;  %1253 = vmatpush1.bf16.msra.mxu1 %v2416_v22  ;;  %v2475_v22 = vld [vmem:[#allocation9 + $0x14] ss:$8 sps:$4 sm:$0xff]  }
 0x13f   :  { %1005 = vmatprep.subr.bf16.mxu0 %v2379_v57  ;;  %1254 = vmatprep.subr.bf16.mxu1 %v2421_v23  ;;  %v2473_v23 = vld [vmem:[#allocation9 + $0x10] ss:$8 sps:$4 sm:$0xff]  }
 0x142   :  { %1006 = vmatpush1.bf16.msra.mxu0 %v2377_v58  ;;  %1255 = vmatpush1.bf16.msra.mxu1 %v2419_v24  ;;  %v2478_v24 = vld [vmem:[#allocation9 + $0x4] ss:$8 sps:$4 sm:$0xff]  }
 0x143   :  { %1007 = vmatprep.subr.bf16.mxu0 %v2382_v59  ;;  %1256 = vmatprep.subr.bf16.mxu1 %v2424_v25  ;;  %v2476_v25 = vld [vmem:[#allocation9] ss:$8 sps:$4 sm:$0xff]  }
 0x146   :  { %1008 = vmatpush1.bf16.msra.mxu0 %v2380_v60  ;;  %1257 = vmatpush1.bf16.msra.mxu1 %v2422_v26  ;;  %v2481_v26 = vld [vmem:[#allocation9 + $0xf4] ss:$8 sps:$4 sm:$0xff]  }
 0x147   :  { %1009 = vmatprep.subr.bf16.mxu0 %v2385_v61  ;;  %1258 = vmatprep.subr.bf16.mxu1 %v2427_v27  ;;  %v2479_v27 = vld [vmem:[#allocation9 + $0xf0] ss:$8 sps:$4 sm:$0xff]  }
 0x14a   :  { %1010 = vmatpush2.bf16.msra.mxu0 %v2383_v62  ;;  %1259 = vmatpush1.bf16.msra.mxu1 %v2425_v28  ;;  %v2484_v28 = vld [vmem:[#allocation9 + $0xe4] ss:$8 sps:$4 sm:$0xff]  }
 0x14b   :  { %1011 = vmatprep.subr.bf16.mxu0 %v2388_v63  ;;  %1260 = vmatprep.subr.bf16.mxu1 %v2430_v29  ;;  %v2482_v29 = vld [vmem:[#allocation9 + $0xe0] ss:$8 sps:$4 sm:$0xff]  }
 0x14e   :  { %1012 = vmatpush2.bf16.msra.mxu0 %v2386_v0  ;;  %1261 = vmatpush1.bf16.msra.mxu1 %v2428_v30  ;;  %v2487_v30 = vld [vmem:[#allocation9 + $0xd4] ss:$8 sps:$4 sm:$0xff]  }
 0x14f   :  { %1013 = vmatprep.subr.bf16.mxu0 %v2391_v1  ;;  %1262 = vmatprep.subr.bf16.mxu1 %v2433_v31  ;;  %v2485_v31 = vld [vmem:[#allocation9 + $0xd0] ss:$8 sps:$4 sm:$0xff]  }
 0x152   :  { %1014 = vmatpush2.bf16.msra.mxu0 %v2389_v2  ;;  %1263 = vmatpush2.bf16.msra.mxu1 %v2431_v32  ;;  %v2448_v2 = vld [vmem:[#allocation7 + $0xa4] ss:$8 sps:$4 sm:$0xff]  }
 0x153   :  { %1015 = vmatprep.subr.bf16.mxu0 %v2394_v3  ;;  %1264 = vmatprep.subr.bf16.mxu1 %v2436_v33  ;;  %v2446_v3 = vld [vmem:[#allocation7 + $0xa0] ss:$8 sps:$4 sm:$0xff]   ;;  %v2490_v32 = vld [vmem:[#allocation9 + $0xc4] ss:$8 sps:$4 sm:$0xff]  }
 0x154   :  { %v2488_v33 = vld [vmem:[#allocation9 + $0xc0] ss:$8 sps:$4 sm:$0xff]  }
 0x156   :  { %1016 = vmatpush2.bf16.msra.mxu0 %v2392_v4  ;;  %1265 = vmatpush2.bf16.msra.mxu1 %v2434_v34  ;;  %v2451_v4 = vld [vmem:[#allocation7 + $0x94] ss:$8 sps:$4 sm:$0xff]  }
 0x157   :  { %1017 = vmatprep.subr.bf16.mxu0 %v2397_v5  ;;  %1266 = vmatprep.subr.bf16.mxu1 %v2439_v35  ;;  %v2449_v5 = vld [vmem:[#allocation7 + $0x90] ss:$8 sps:$4 sm:$0xff]   ;;  %v2493_v34 = vld [vmem:[#allocation9 + $0xb4] ss:$8 sps:$4 sm:$0xff]  }
 0x158   :  { %v2491_v35 = vld [vmem:[#allocation9 + $0xb0] ss:$8 sps:$4 sm:$0xff]  }
 0x15a   :  { %1018 = vmatpush2.bf16.msra.mxu0 %v2395_v6  ;;  %1267 = vmatpush2.bf16.msra.mxu1 %v2437_v36  ;;  %v2454_v6 = vld [vmem:[#allocation7 + $0x84] ss:$8 sps:$4 sm:$0xff]   ;;  %v821_v36 = vld [vmem:[%s2896_s6] sm:$0x3] }
 0x15b   :  { %1019 = vmatprep.subr.bf16.mxu0 %v2400_v7  ;;  %1268 = vmatprep.subr.bf16.mxu1 %v2442_v37  ;;  %v2452_v7 = vld [vmem:[#allocation7 + $0x80] ss:$8 sps:$4 sm:$0xff]  }
 0x15e   :  { %1020 = vmatpush2.bf16.msra.mxu0 %v2398_v8  ;;  %1269 = vmatpush2.bf16.msra.mxu1 %v2440_v38  ;;  %v2455_v8 = vld [vmem:[#allocation9 + $0x70] ss:$8 sps:$4 sm:$0xff]   ;;  %v830_v38 = vrot.slane %v821_v36, %v2850_v9 }
 0x15f   :  { %1021 = vmatprep.subr.bf16.mxu0 %v2403_v11  ;;  %1270 = vmatprep.subr.bf16.mxu1 %v2445_v39  ;;  %v2457_v11 = vld [vmem:[#allocation9 + $0x74] ss:$8 sps:$4 sm:$0xff]   ;;  %v826_v39 = vrot.slane %v821_v36, %v2852_v10 }
 0x162   :  { %1022 = vmatpush2.bf16.msra.mxu0 %v2401_v12  ;;  %1271 = vmatpush2.bf16.msra.mxu1 %v2443_v40  ;;  %v2460_v12 = vld [vmem:[#allocation9 + $0x64] ss:$8 sps:$4 sm:$0xff]  }
 0x163   :  { %1023 = vmatprep.subr.bf16.mxu0 %v2406_v13  ;;  %1272 = vmatprep.subr.bf16.mxu1 %v2448_v2  ;;  %v2458_v13 = vld [vmem:[#allocation9 + $0x60] ss:$8 sps:$4 sm:$0xff]  }
 0x164   :  { %v2512_v2 = vld [vmem:[#allocation10 + $0x40] ss:$8 sps:$4 sm:$0xff]  }
 0x166   :  { %1024 = vmatpush2.bf16.msra.mxu0 %v2404_v14  ;;  %1273 = vmatpush2.bf16.msra.mxu1 %v2446_v3  ;;  %v2463_v14 = vld [vmem:[#allocation9 + $0x54] ss:$8 sps:$4 sm:$0xff]  }
 0x167   :  { %1274 = vmatprep.subr.bf16.mxu1 %v2451_v4  ;;  %1499 = vmatprep.subr.bf16.mxu0 %v2457_v11  ;;  %v2517_v3 = vld [vmem:[#allocation10 + $0x34] ss:$8 sps:$4 sm:$0xff]   ;;  %v2515_v4 = vld [vmem:[#allocation10 + $0x30] ss:$8 sps:$4 sm:$0xff]   ;;  %v2526_v11 = vld [vmem:[#allocation10 + $0x4] ss:$8 sps:$4 sm:$0xff]  }
 0x16a   :  { %1275 = vmatpush2.bf16.msra.mxu1 %v2449_v5  ;;  %v2520_v5 = vld [vmem:[#allocation10 + $0x24] ss:$8 sps:$4 sm:$0xff]  }
 0x16b   :  { %1276 = vmatprep.subr.bf16.mxu1 %v2454_v6  ;;  %v2518_v6 = vld [vmem:[#allocation10 + $0x20] ss:$8 sps:$4 sm:$0xff]  }
 0x16e   :  { %1277 = vmatpush2.bf16.msra.mxu1 %v2452_v7  ;;  %v2523_v7 = vld [vmem:[#allocation10 + $0x14] ss:$8 sps:$4 sm:$0xff]  }
 0x1e9   :  { %v731_v41 = vpop.f32.mrf.mxu0 }
 0x1ea   :  { %v732_v52 = vadd.f32 %v731_v41, %v370_v46 }
 0x1eb   :  { %v733_v42 = vpop.f32.mrf.mxu0 }
 0x1ec   :  { %v734_v50 = vadd.f32 %v733_v42, %v374_v45 }
 0x1ed   :  { %v735_v44 = vpop.f32.mrf.mxu0 }
 0x1ee   :  { %v736_v51 = vadd.f32 %v735_v44, %v370_v46 }
 0x1ef   :  { %v737_v48 = vpop.f32.mrf.mxu0 }
 0x1f0   :  { %v738_v54 = vadd.f32 %v737_v48, %v374_v45 }
 0x1f1   :  { %v774_v47 = vpop.f32.mrf.mxu1 }
 0x1f2   :  { %v775_v57 = vadd.f32 %v774_v47, %v732_v52 }
 0x1f3   :  { %v776_v49 = vpop.f32.mrf.mxu1 }
 0x1f4   :  { %v777_v55 = vadd.f32 %v776_v49, %v734_v50  ;;  %v783_v63 = vmax.f32 %v775_v57, 0.0  ;;  %v2502_v57 = vld [vmem:[#allocation9 + $0x84] ss:$8 sps:$4 sm:$0xff]  }
 0x1f5   :  { %v778_v53 = vpop.f32.mrf.mxu1 }
 0x1f6   :  { %v779_v56 = vadd.f32 %v778_v53, %v736_v51  ;;  %v784_v61 = vmax.f32 %v777_v55, 0.0  ;;  %v2496_v53 = vld [vmem:[#allocation9 + $0xa4] ss:$8 sps:$4 sm:$0xff]   ;;  %v2499_v55 = vld [vmem:[#allocation9 + $0x94] ss:$8 sps:$4 sm:$0xff]  }
 0x1f7   :  { %v780_v58 = vpop.f32.mrf.mxu1 }
 0x1f8   :  { %v781_v59 = vadd.f32 %v780_v58, %v738_v54  ;;  %v785_v60 = vmax.f32 %v779_v56, 0.0  ;;  %v2494_v54 = vld [vmem:[#allocation9 + $0xa0] ss:$8 sps:$4 sm:$0xff]   ;;  %v2497_v56 = vld [vmem:[#allocation9 + $0x90] ss:$8 sps:$4 sm:$0xff]  }
 0x1f9   :  { %v2500_v58 = vld [vmem:[#allocation9 + $0x80] ss:$8 sps:$4 sm:$0xff]  }
 0x1fa   :  { %v786_v62 = vmax.f32 %v781_v59, 0.0  ;;  %v787_v1 = vpack.c.bf16 %v785_v60, %v783_v63  ;;  %v2503_v59 = vld [vmem:[#allocation10 + $0x70] ss:$8 sps:$4 sm:$0xff]   ;;  %v2505_v60 = vld [vmem:[#allocation10 + $0x74] ss:$8 sps:$4 sm:$0xff]  }
 0x1fb   :  { %1752 = vmatprep.subr.bf16.mxu1 %v2505_v60  ;;  %v2511_v63 = vld [vmem:[#allocation10 + $0x54] ss:$8 sps:$4 sm:$0xff]  }
 0x1fc   :  { %v788_v0 = vpack.c.bf16 %v786_v62, %v784_v61  ;;  %v2508_v61 = vld [vmem:[#allocation10 + $0x64] ss:$8 sps:$4 sm:$0xff]   ;;  %v2506_v62 = vld [vmem:[#allocation10 + $0x60] ss:$8 sps:$4 sm:$0xff]  }
 0x1fe   :  { %1025 = vmatprep.mubr.bf16.mxu0 %v788_v0  ;;  %v2509_v0 = vld [vmem:[#allocation10 + $0x50] ss:$8 sps:$4 sm:$0xff]  }
 0x1ff   :  { %1026 = vmatmul.mubr.bf16.vlgmr.msra.gmra.mxu0 %v787_v1  ;;  %v2514_v1 = vld [vmem:[#allocation10 + $0x44] ss:$8 sps:$4 sm:$0xff]  }
 0x200   :  { %1500 = vmatpush1.bf16.msra.mxu0 %v2455_v8  ;;  %v2521_v8 = vld [vmem:[#allocation10 + $0x10] ss:$8 sps:$4 sm:$0xff]  }
 0x201   :  { %1501 = vmatprep.subr.bf16.mxu0 %v2460_v12  ;;  %v2524_v12 = vld [vmem:[#allocation10] ss:$8 sps:$4 sm:$0xff]  }
 0x204   :  { %1502 = vmatpush1.bf16.msra.mxu0 %v2458_v13  ;;  %v2529_v13 = vld [vmem:[#allocation10 + $0xf4] ss:$8 sps:$4 sm:$0xff]  }
 0x205   :  { %1503 = vmatprep.subr.bf16.mxu0 %v2463_v14  ;;  %v2527_v14 = vld [vmem:[#allocation10 + $0xf0] ss:$8 sps:$4 sm:$0xff]  }
 0x208   :  { %1504 = vmatpush1.bf16.msra.mxu0 %v2461_v15  ;;  %v2532_v15 = vld [vmem:[#allocation10 + $0xe4] ss:$8 sps:$4 sm:$0xff]  }
 0x209   :  { %1505 = vmatprep.subr.bf16.mxu0 %v2466_v16  ;;  %v2530_v16 = vld [vmem:[#allocation10 + $0xe0] ss:$8 sps:$4 sm:$0xff]  }
 0x20c   :  { %1506 = vmatpush1.bf16.msra.mxu0 %v2464_v17  ;;  %v2535_v17 = vld [vmem:[#allocation10 + $0xd4] ss:$8 sps:$4 sm:$0xff]  }
 0x20d   :  { %1507 = vmatprep.subr.bf16.mxu0 %v2469_v18  ;;  %v2533_v18 = vld [vmem:[#allocation10 + $0xd0] ss:$8 sps:$4 sm:$0xff]  }
 0x210   :  { %1508 = vmatpush1.bf16.msra.mxu0 %v2467_v19  ;;  %v2538_v19 = vld [vmem:[#allocation10 + $0xc4] ss:$8 sps:$4 sm:$0xff]  }
 0x211   :  { %1509 = vmatprep.subr.bf16.mxu0 %v2472_v20  ;;  %v2536_v20 = vld [vmem:[#allocation10 + $0xc0] ss:$8 sps:$4 sm:$0xff]  }
 0x214   :  { %1510 = vmatpush1.bf16.msra.mxu0 %v2470_v21  ;;  %v2541_v21 = vld [vmem:[#allocation10 + $0xb4] ss:$8 sps:$4 sm:$0xff]  }
 0x215   :  { %1511 = vmatprep.subr.bf16.mxu0 %v2475_v22  ;;  %v2539_v22 = vld [vmem:[#allocation10 + $0xb0] ss:$8 sps:$4 sm:$0xff]  }
 0x218   :  { %1512 = vmatpush1.bf16.msra.mxu0 %v2473_v23  ;;  %v1074_v23 = vld [vmem:[%s2898_s8] sm:$0x3] }
 0x219   :  { %1513 = vmatprep.subr.bf16.mxu0 %v2478_v24 }
 0x21c   :  { %1514 = vmatpush1.bf16.msra.mxu0 %v2476_v25  ;;  %v1083_v25 = vrot.slane %v1074_v23, %v2850_v9 }
 0x21d   :  { %1515 = vmatprep.subr.bf16.mxu0 %v2481_v26  ;;  %v1079_v26 = vrot.slane %v1074_v23, %v2852_v10 }
 0x220   :  { %1516 = vmatpush2.bf16.msra.mxu0 %v2479_v27 }
 0x221   :  { %1517 = vmatprep.subr.bf16.mxu0 %v2484_v28 }
 0x224   :  { %1518 = vmatpush2.bf16.msra.mxu0 %v2482_v29 }
 0x225   :  { %1519 = vmatprep.subr.bf16.mxu0 %v2487_v30 }
 0x228   :  { %1520 = vmatpush2.bf16.msra.mxu0 %v2485_v31 }
 0x229   :  { %1521 = vmatprep.subr.bf16.mxu0 %v2490_v32 }
 0x22c   :  { %1522 = vmatpush2.bf16.msra.mxu0 %v2488_v33 }
 0x22d   :  { %1523 = vmatprep.subr.bf16.mxu0 %v2493_v34 }
 0x230   :  { %1524 = vmatpush2.bf16.msra.mxu0 %v2491_v35 }
 0x231   :  { %1525 = vmatprep.subr.bf16.mxu0 %v2496_v53  ;;  %v2558_v53 = vld [vmem:[#allocation12 + $0x20] sm:$0xff]  }
 0x234   :  { %1526 = vmatpush2.bf16.msra.mxu0 %v2494_v54  ;;  %v2559_v54 = vld [vmem:[#allocation12 + $0x58] sm:$0xff]  }
 0x235   :  { %1527 = vmatprep.subr.bf16.mxu0 %v2499_v55  ;;  %v2560_v55 = vld [vmem:[#allocation12 + $0x18] sm:$0xff]  }
 0x238   :  { %1528 = vmatpush2.bf16.msra.mxu0 %v2497_v56  ;;  %v1327_v56 = vld [vmem:[%s2900_s10] sm:$0x3] }
 0x239   :  { %1529 = vmatprep.subr.bf16.mxu0 %v2502_v57 }
 0x23c   :  { %1530 = vmatpush2.bf16.msra.mxu0 %v2500_v58  ;;  %v1336_v58 = vrot.slane %v1327_v56, %v2850_v9 }
 0x2bf   :  { %v1027_v37 = vpop.f32.mrf.mxu0 }
 0x2c0   :  { %v1028_v44 = vadd.f32 %v1027_v37, %v826_v39 }
 0x2c1   :  { %v1029_v40 = vpop.f32.mrf.mxu0 }
 0x2c2   :  { %v1030_v42 = vadd.f32 %v1029_v40, %v830_v38  ;;  %v1036_v50 = vmax.f32 %v1028_v44, 0.0  ;;  %v2544_v40 = vld [vmem:[#allocation10 + $0xa4] ss:$8 sps:$4 sm:$0xff]  }
 0x2c3   :  { %v1031_v41 = vpop.f32.mrf.mxu0  ;;  %v2550_v44 = vld [vmem:[#allocation10 + $0x84] ss:$8 sps:$4 sm:$0xff]  }
 0x2c4   :  { %v1032_v43 = vadd.f32 %v1031_v41, %v826_v39  ;;  %v1037_v48 = vmax.f32 %v1030_v42, 0.0  ;;  %v2542_v41 = vld [vmem:[#allocation10 + $0xa0] ss:$8 sps:$4 sm:$0xff]   ;;  %v2547_v42 = vld [vmem:[#allocation10 + $0x94] ss:$8 sps:$4 sm:$0xff]  }
 0x2c5   :  { %v1033_v45 = vpop.f32.mrf.mxu0 }
 0x2c6   :  { %v1034_v46 = vadd.f32 %v1033_v45, %v830_v38  ;;  %v1038_v47 = vmax.f32 %v1032_v43, 0.0  ;;  %v2545_v43 = vld [vmem:[#allocation10 + $0x90] ss:$8 sps:$4 sm:$0xff]   ;;  %v2548_v45 = vld [vmem:[#allocation10 + $0x80] ss:$8 sps:$4 sm:$0xff]  }
 0x2c8   :  { %v1039_v49 = vmax.f32 %v1034_v46, 0.0  ;;  %v1040_v52 = vpack.c.bf16 %v1038_v47, %v1036_v50  ;;  %v2551_v46 = vld [vmem:[#allocation12 + $0x78] sm:$0xff]   ;;  %v2555_v50 = vld [vmem:[#allocation12 + $0x68] sm:$0xff]  }
 0x2c9   :  { %v2552_v47 = vld [vmem:[#allocation12 + $0x38] sm:$0xff]   ;;  %2220 = vmatprep.subr.bf16.mxu0 %v2551_v46 }
 0x2ca   :  { %v1041_v51 = vpack.c.bf16 %v1039_v49, %v1037_v48  ;;  %v2553_v48 = vld [vmem:[#allocation12 + $0x70] sm:$0xff]  }
 0x2cb   :  { %v2554_v49 = vld [vmem:[#allocation12 + $0x30] sm:$0xff]  }
 0x2cc   :  { %1278 = vmatprep.mubr.bf16.mxu1 %v1041_v51  ;;  %v2556_v51 = vld [vmem:[#allocation12 + $0x28] sm:$0xff]  }
 0x2cd   :  { %1279 = vmatmul.mubr.bf16.vlgmr.msra.gmra.mxu1 %v1040_v52  ;;  %v2557_v52 = vld [vmem:[#allocation12 + $0x60] sm:$0xff]  }
 0x2ce   :  { %1753 = vmatpush1.bf16.msra.mxu1 %v2503_v59  ;;  %v1332_v59 = vrot.slane %v1327_v56, %v2852_v10 }
 0x2cf   :  { %1754 = vmatprep.subr.bf16.mxu1 %v2508_v61 }
 0x2d2   :  { %1755 = vmatpush1.bf16.msra.mxu1 %v2506_v62 }
 0x2d3   :  { %1756 = vmatprep.subr.bf16.mxu1 %v2511_v63 }
 0x2d6   :  { %1757 = vmatpush1.bf16.msra.mxu1 %v2509_v0 }
 0x2d7   :  { %1758 = vmatprep.subr.bf16.mxu1 %v2514_v1 }
 0x2da   :  { %1759 = vmatpush1.bf16.msra.mxu1 %v2512_v2 }
 0x2db   :  { %1760 = vmatprep.subr.bf16.mxu1 %v2517_v3 }
 0x2de   :  { %1761 = vmatpush1.bf16.msra.mxu1 %v2515_v4 }
 0x2df   :  { %1762 = vmatprep.subr.bf16.mxu1 %v2520_v5 }
 0x2e2   :  { %1763 = vmatpush1.bf16.msra.mxu1 %v2518_v6 }
 0x2e3   :  { %1764 = vmatprep.subr.bf16.mxu1 %v2523_v7 }
 0x2e6   :  { %1765 = vmatpush1.bf16.msra.mxu1 %v2521_v8 }
 0x2e7   :  { %1766 = vmatprep.subr.bf16.mxu1 %v2526_v11  ;;  %v2561_v11 = vld [vmem:[#allocation12 + $0x50] sm:$0xff]  }
 0x2ea   :  { %1767 = vmatpush1.bf16.msra.mxu1 %v2524_v12  ;;  %v2562_v12 = vld [vmem:[#allocation12 + $0x10] sm:$0xff]  }
 0x2eb   :  { %1768 = vmatprep.subr.bf16.mxu1 %v2529_v13  ;;  %v2563_v13 = vld [vmem:[#allocation12 + $0x48] sm:$0xff]  }
 0x2ee   :  { %1769 = vmatpush2.bf16.msra.mxu1 %v2527_v14  ;;  %v2564_v14 = vld [vmem:[#allocation12 + $0x8] sm:$0xff]  }
 0x2ef   :  { %1770 = vmatprep.subr.bf16.mxu1 %v2532_v15  ;;  %v2565_v15 = vld [vmem:[#allocation12 + $0x40] sm:$0xff]  }
 0x2f2   :  { %1771 = vmatpush2.bf16.msra.mxu1 %v2530_v16  ;;  %v2566_v16 = vld [vmem:[#allocation12] sm:$0xff]  }
 0x2f3   :  { %1772 = vmatprep.subr.bf16.mxu1 %v2535_v17  ;;  %v1580_v17 = vld [vmem:[%s2902_s12] sm:$0x3] }
 0x2f6   :  { %1773 = vmatpush2.bf16.msra.mxu1 %v2533_v18 }
 0x2f7   :  { %1774 = vmatprep.subr.bf16.mxu1 %v2538_v19  ;;  %v1589_v19 = vrot.slane %v1580_v17, %v2850_v9 }
 0x2fa   :  { %1775 = vmatpush2.bf16.msra.mxu1 %v2536_v20  ;;  %v1585_v20 = vrot.slane %v1580_v17, %v2852_v10  ;;  %v2194_v10 = vld [vmem:[%s2904_s14] ss:$0 sm:$0xff] }
 0x2fb   :  { %1776 = vmatprep.subr.bf16.mxu1 %v2541_v21 }
 0x2fe   :  { %1777 = vmatpush2.bf16.msra.mxu1 %v2539_v22 }
 0x2ff   :  { %1778 = vmatprep.subr.bf16.mxu1 %v2544_v40 }
 0x302   :  { %1779 = vmatpush2.bf16.msra.mxu1 %v2542_v41 }
 0x303   :  { %1780 = vmatprep.subr.bf16.mxu1 %v2547_v42 }
 0x306   :  { %1781 = vmatpush2.bf16.msra.mxu1 %v2545_v43 }
 0x307   :  { %1782 = vmatprep.subr.bf16.mxu1 %v2550_v44 }
 0x30a   :  { %1783 = vmatpush2.bf16.msra.mxu1 %v2548_v45 }
 0x38d   :  { %v1280_v24 = vpop.f32.mrf.mxu1 }
 0x38e   :  { %v1281_v31 = vadd.f32 %v1280_v24, %v1079_v26 }
 0x38f   :  { %v1282_v27 = vpop.f32.mrf.mxu1 }
 0x390   :  { %v1283_v29 = vadd.f32 %v1282_v27, %v1083_v25  ;;  %v1289_v37 = vmax.f32 %v1281_v31, 0.0 }
 0x391   :  { %v1284_v28 = vpop.f32.mrf.mxu1 }
 0x392   :  { %v1285_v30 = vadd.f32 %v1284_v28, %v1079_v26  ;;  %v1290_v35 = vmax.f32 %v1283_v29, 0.0 }
 0x393   :  { %v1286_v32 = vpop.f32.mrf.mxu1 }
 0x394   :  { %v1287_v33 = vadd.f32 %v1286_v32, %v1083_v25  ;;  %v1291_v34 = vmax.f32 %v1285_v30, 0.0 }
 0x396   :  { %v1292_v36 = vmax.f32 %v1287_v33, 0.0  ;;  %v1293_v39 = vpack.c.bf16 %v1291_v34, %v1289_v37 }
 0x398   :  { %v1294_v38 = vpack.c.bf16 %v1292_v36, %v1290_v35 }
 0x39a   :  { %1531 = vmatprep.mubr.bf16.mxu0 %v1294_v38 }
 0x39b   :  { %1532 = vmatmul.mubr.bf16.vlgmr.msra.gmra.mxu0 %v1293_v39 }
 0x39c   :  { %2221 = vmatpush3.bf16.msra.mxu0 %v2552_v47 }
 0x39d   :  { %2222 = vmatprep.subr.bf16.mxu0 %v2553_v48 }
 0x3a0   :  { %2223 = vmatpush3.bf16.msra.mxu0 %v2554_v49 }
 0x3a1   :  { %2224 = vmatprep.subr.bf16.mxu0 %v2555_v50 }
 0x3a4   :  { %2225 = vmatpush3.bf16.msra.mxu0 %v2556_v51 }
 0x3a5   :  { %2226 = vmatprep.subr.bf16.mxu0 %v2557_v52 }
 0x3a8   :  { %2227 = vmatpush3.bf16.msra.mxu0 %v2558_v53 }
 0x3a9   :  { %2228 = vmatprep.subr.bf16.mxu0 %v2559_v54 }
 0x3ac   :  { %2229 = vmatpush3.bf16.msra.mxu0 %v2560_v55 }
 0x3ad   :  { %2230 = vmatprep.subr.bf16.mxu0 %v2561_v11 }
 0x3b0   :  { %2231 = vmatpush3.bf16.msra.mxu0 %v2562_v12 }
 0x3b1   :  { %2232 = vmatprep.subr.bf16.mxu0 %v2563_v13 }
 0x3b4   :  { %2233 = vmatpush3.bf16.msra.mxu0 %v2564_v14 }
 0x3b5   :  { %2234 = vmatprep.subr.bf16.mxu0 %v2565_v15 }
 0x3b8   :  { %2235 = vmatpush3.bf16.msra.mxu0 %v2566_v16 }
 0x45b   :  { %v1533_v57 = vpop.f32.mrf.mxu0 }
 0x45c   :  { %v1534_v0 = vadd.f32 %v1533_v57, %v1332_v59 }
 0x45d   :  { %v1535_v60 = vpop.f32.mrf.mxu0 }
 0x45e   :  { %v1536_v62 = vadd.f32 %v1535_v60, %v1336_v58  ;;  %v1542_v6 = vmax.f32 %v1534_v0, 0.0 }
 0x45f   :  { %v1537_v61 = vpop.f32.mrf.mxu0 }
 0x460   :  { %v1538_v63 = vadd.f32 %v1537_v61, %v1332_v59  ;;  %v1543_v4 = vmax.f32 %v1536_v62, 0.0 }
 0x461   :  { %v1539_v1 = vpop.f32.mrf.mxu0 }
 0x462   :  { %v1540_v2 = vadd.f32 %v1539_v1, %v1336_v58  ;;  %v1544_v3 = vmax.f32 %v1538_v63, 0.0 }
 0x464   :  { %v1545_v5 = vmax.f32 %v1540_v2, 0.0  ;;  %v1546_v8 = vpack.c.bf16 %v1544_v3, %v1542_v6 }
 0x466   :  { %v1547_v7 = vpack.c.bf16 %v1545_v5, %v1543_v4 }
 0x468   :  { %1784 = vmatprep.mubr.bf16.mxu1 %v1547_v7 }
 0x469   :  { %1785 = vmatmul.mubr.bf16.vlgmr.msra.gmra.mxu1 %v1546_v8 }
 0x529   :  { %v1786_v18 = vpop.f32.mrf.mxu1 }
 0x52a   :  { %v1787_v25 = vadd.f32 %v1786_v18, %v1585_v20 }
 0x52b   :  { %v1788_v21 = vpop.f32.mrf.mxu1 }
 0x52c   :  { %v1789_v23 = vadd.f32 %v1788_v21, %v1589_v19  ;;  %v1795_v31 = vmax.f32 %v1787_v25, 0.0 }
 0x52d   :  { %v1790_v22 = vpop.f32.mrf.mxu1 }
 0x52e   :  { %v1791_v24 = vadd.f32 %v1790_v22, %v1585_v20  ;;  %v1796_v29 = vmax.f32 %v1789_v23, 0.0 }
 0x52f   :  { %v1792_v26 = vpop.f32.mrf.mxu1 }
 0x530   :  { %v1793_v27 = vadd.f32 %v1792_v26, %v1589_v19  ;;  %v1797_v28 = vmax.f32 %v1791_v24, 0.0 }
 0x532   :  { %v1798_v30 = vmax.f32 %v1793_v27, 0.0  ;;  %v1799_v33 = vpack.c.bf16 %v1797_v28, %v1795_v31 }
 0x534   :  { %v1800_v32 = vpack.c.bf16 %v1798_v30, %v1796_v29 }
 0x536   :  { %1968 = vmatprep.mubr.bf16.mxu0 %v1800_v32 }
 0x537   :  { %1969 = vmatmul.mubr.bf16.vlgmr.msra.gmra.mxu0 %v1799_v33 }
 0x5f7   :  { %v2236_v34 = vpop.f32.mrf.mxu0 }
 0x5f9   :  { %v2237_v35 = vpop.f32.mrf.mxu0 }
 0x5fa   :  { %v2238_v36 = vadd.f32 %v2237_v35, %v2236_v34 }
 0x5fb   :  { %v2239_v9 = vpop.f32.mrf.mxu0 }
 0x5fc   :  { %v1971_v39 = vadd.f32 %v2238_v36, %v2194_v10 }
 0x5fd   :  { %v2240_v37 = vpop.f32.mrf.mxu0 }
 0x5fe   :  { %v2241_v38 = vadd.f32 %v2240_v37, %v2239_v9 }
 0x600   :  { %v1974_v40 = vadd.f32 %v2241_v38, %v2194_v10 }
 0x602   :  { %v2218_v41 = vpack.c.bf16 %v1974_v40, %v1971_v39 }
 0x604   :  { %2219 = vst [vmem:[%s2905_s15] sm:$0xff] %v2218_v41  }
 0x605   :  { %1991 = vsyncpa [#allocation3], 1 }
 0x606   :  { %1992 = vsyncpa [#allocation5], 1 }
 0x607   :  { %1993 = vsyncpa [#allocation8], 1 }
 0x608   :  { %1994 = vsyncpa [#allocation11], 1 }

</bundles_post_ra>
